<compile_context>
chip_gen: v7x
topology: tpu7x:2x2x1
jax: 0.10.0
libtpu: 0.0.40
codegen_flags: <defaults>
</compile_context>

<pallas_src>
import functools

import numpy as np
import jax
import jax.numpy as jnp
from jax.experimental import pallas as pl
from jax.experimental.pallas import tpu as pltpu


# --------------------------------------------------------------------------- #
# Fused kernel. Grid axis = batch blocks (Nb images => rows_per_step = Nb*H
# rows of the flattened (N*H, W*Cout) activation).
#   x_ref    : (rows_per_step, K*Wp*Cin)  bf16 row-window input
#   w_ref    : (K*Wp*Cin, W*Cout)         bf16 banded weights (kh+kw+cin folded)
#   cmap_ref : (W*Cout, W*Cout)           f32  lane->channel reduce + broadcast
#   gamma/beta: (1, W*Cout)               f32  lane-broadcast BN affine params
#   o_ref    : (N*H, W*Cout)              f32  resident output block
#   stats_ref: (2, W*Cout)                f32  VMEM scratch [sum; sumsq]
# --------------------------------------------------------------------------- #
def _fused_conv_bn_relu_kernel(x_ref, w_ref, cmap_ref, gamma_ref, beta_ref,
                               o_ref, stats_ref, *, rows_per_step, count, eps):
    i = pl.program_id(0)

    @pl.when(i == 0)
    def _init():
        stats_ref[...] = jnp.zeros_like(stats_ref)

    # One deep MXU matmul per step: (rows, 216) x (216, 128), f32 accumulation.
    acc = jnp.dot(x_ref[...], w_ref[...], preferred_element_type=jnp.float32)

    start = pl.multiple_of(i * rows_per_step, rows_per_step)
    o_ref[pl.ds(start, rows_per_step), :] = acc

    # Per-lane BN partial sums (sublane reduction -> XLU slot); the two stats
    # rows are written separately to avoid a sublane-concat relayout.
    stats_ref[0:1, :] += jnp.sum(acc, axis=0, keepdims=True)
    stats_ref[1:2, :] += jnp.sum(acc * acc, axis=0, keepdims=True)

    @pl.when(i == pl.num_programs(0) - 1)
    def _epilogue():
        # Per-lane sums -> per-channel sums, replicated back onto the (w,cout)
        # lane layout via one precomputed (WC, WC) map (single small matmul).
        chan = jnp.dot(stats_ref[...], cmap_ref[...],
                       preferred_element_type=jnp.float32)        # (2, W*Cout)
        inv_n = 1.0 / count
        mean = chan[0:1, :] * inv_n
        var = chan[1:2, :] * inv_n - mean * mean                  # biased (training mode)
        scale = gamma_ref[...] * jax.lax.rsqrt(var + eps)         # (1, W*Cout)
        shift = beta_ref[...] - mean * scale
        # Normalize + ReLU the whole resident conv output in place; HBM
        # writeback happens once, after this final grid step.
        o_ref[...] = jnp.maximum(o_ref[...] * scale + shift, 0.0)


# --------------------------------------------------------------------------- #
# Wrapper: PyTorch layouts in / out (NCHW activations, OIHW weights).
# --------------------------------------------------------------------------- #
def convolution_forward(x_nchw, weight_oihw, gamma, beta, *, stride=1, eps=1e-5):
    assert stride == 1  # TODO(synk): generalize to stride > 1
    N, Cin, H, W = x_nchw.shape
    Cout, Cin_w, K, K2 = weight_oihw.shape
    assert Cin_w == Cin and K == K2 and K % 2 == 1
    pad = (K - 1) // 2
    Hp, Wp = H + 2 * pad, W + 2 * pad
    WC_in, WC_out = Wp * Cin, W * Cout
    KWC_in = K * WC_in

    # ---- layout glue (XLA): NHWC, spatial pad, kh row-windows, bf16 -------- #
    # TODO(synk): keep the model NHWC/lane-packed end-to-end to drop these
    # entry/exit transposes (each is an extra full HBM pass in XLA).
    x_nhwc = jnp.transpose(x_nchw, (0, 2, 3, 1))
    x_pad = jnp.pad(x_nhwc, ((0, 0), (pad, pad), (pad, pad), (0, 0)))
    x_l = x_pad.reshape(N, Hp, WC_in)
    # Fold the K kh-taps into the contraction axis:
    #   x_win[n, h, kh*WC_in + j] = x_l[n, h + kh, j]
    # Built here so all kernel-side reads stay 8-sublane-aligned.
    x_win = jnp.concatenate([x_l[:, kh:kh + H, :] for kh in range(K)], axis=-1)
    x_win = x_win.reshape(N * H, KWC_in).astype(jnp.bfloat16)

    # Banded weight: wb[kh*WC_in + p*Cin + ci, w*Cout + co]
    #   = W[co, ci, kh, p - w]  for 0 <= p - w < K, else 0.
    # TODO(synk): wb is O(K*W^2*Cin*Cout); tile Cout/W (or fall back to
    # per-kw matmuls / im2col) before scaling W*C up, especially on v7x
    # where physical VMEM is only 64 MiB.
    w_hwio = jnp.transpose(weight_oihw, (2, 3, 1, 0))            # (Kh,Kw,Cin,Cout)
    sel = (np.arange(Wp)[None, :, None]
           == np.arange(W)[None, None, :] + np.arange(K)[:, None, None])
    sel = sel.astype(np.float32)                                  # (Kw, Wp, W)
    wb = jnp.einsum("kpw,hkio->hpiwo", sel, w_hwio)               # (Kh,Wp,Cin,W,Cout)
    wb = wb.reshape(KWC_in, WC_out).astype(jnp.bfloat16)

    # Hoisted BN constants: lane->channel reduce and channel->lane broadcast
    # folded into one (WC, WC) map; gamma/beta pre-broadcast onto lanes.
    lane_chan = np.arange(WC_out) % Cout
    cmap = jnp.asarray((lane_chan[:, None] == lane_chan[None, :])
                       .astype(np.float32))                       # (WC, WC)
    gamma_l = jnp.tile(gamma.astype(jnp.float32), W).reshape(1, WC_out)
    beta_l = jnp.tile(beta.astype(jnp.float32), W).reshape(1, WC_out)

    # ---- batch blocking: Nb images per grid step (grows the matmul M dim) -- #
    Nb = N
    for cand in range(min(N, max(1, 256 // H)), 0, -1):
        if N % cand == 0 and (cand == N or (cand * H) % 8 == 0):
            Nb = cand
            break
    rows_per_step = Nb * H
    n_steps = N // Nb

    # Fusion keeps the whole conv output resident in VMEM; gate on size.
    # TODO(synk): add a tiled two-pass fallback (halo'd H tiling, per-image
    # partial stats with a "parallel" batch axis for v7x) for large activations.
    resident_bytes = (N * H * WC_out * 4                      # output block
                      + 2 * rows_per_step * KWC_in * 2        # x double buffer
                      + KWC_in * WC_out * 2                   # banded weight
                      + WC_out * WC_out * 4)                  # cmap
    assert resident_bytes < 32 * 1024 * 1024, "activation too large to fuse"

    out_flat = pl.pallas_call(
        functools.partial(_fused_conv_bn_relu_kernel,
                          rows_per_step=rows_per_step,
                          count=float(N * H * W), eps=eps),
        out_shape=jax.ShapeDtypeStruct((N * H, WC_out), jnp.float32),
        grid_spec=pltpu.PrefetchScalarGridSpec(
            num_scalar_prefetch=0,
            grid=(n_steps,),
            in_specs=[
                pl.BlockSpec((rows_per_step, KWC_in), lambda i: (i, 0)),
                pl.BlockSpec((KWC_in, WC_out), lambda i: (0, 0)),
                pl.BlockSpec((WC_out, WC_out), lambda i: (0, 0)),
                pl.BlockSpec((1, WC_out), lambda i: (0, 0)),
                pl.BlockSpec((1, WC_out), lambda i: (0, 0)),
            ],
            out_specs=pl.BlockSpec((N * H, WC_out), lambda i: (0, 0)),
            scratch_shapes=[pltpu.VMEM((2, WC_out), jnp.float32)],
        ),
        # Stats accumulate across the batch-block axis and the output block is
        # resident -> sequential grid ("arbitrary").
        compiler_params=pltpu.CompilerParams(
            dimension_semantics=("arbitrary",)),
    )(x_win, wb, cmap, gamma_l, beta_l)

    # Back to PyTorch NCHW.
    return jnp.transpose(out_flat.reshape(N, H, W, Cout), (0, 3, 1, 2))


# Pure-JAX reference (matches the kernel's bf16 MXU inputs, f32 accumulation).
def _reference(x_nchw, weight_oihw, gamma, beta, eps=1e-5):
    xb = x_nchw.astype(jnp.bfloat16).astype(jnp.float32)
    wb = weight_oihw.astype(jnp.bfloat16).astype(jnp.float32)
    pad = (weight_oihw.shape[-1] - 1) // 2
    y = jax.lax.conv_general_dilated(
        xb, wb, window_strides=(1, 1),
        padding=((pad, pad), (pad, pad)),
        dimension_numbers=("NCHW", "OIHW", "NCHW"),
        precision=jax.lax.Precision.HIGHEST)
    mean = jnp.mean(y, axis=(0, 2, 3), keepdims=True)
    var = jnp.mean((y - mean) ** 2, axis=(0, 2, 3), keepdims=True)
    yhat = (y - mean) * jax.lax.rsqrt(var + eps)
    out = yhat * gamma.reshape(1, -1, 1, 1) + beta.reshape(1, -1, 1, 1)
    return jnp.maximum(out, 0.0)


if __name__ == "__main__":
    # Small shapes consistent with the module: in_dim=4, out_dim=8, kernel=3.
    N, Cin, H, W = 2, 4, 16, 16
    Cout, K = 8, 3

    key = jax.random.PRNGKey(0)
    kx, kw_, kg, kb = jax.random.split(key, 4)
    x = jax.random.normal(kx, (N, Cin, H, W), jnp.float32)
    # Deterministic synthetic parameters (no checkpoint load).
    weight = 0.1 * jax.random.normal(kw_, (Cout, Cin, K, K), jnp.float32)
    gamma = 1.0 + 0.1 * jax.random.normal(kg, (Cout,), jnp.float32)
    beta = 0.1 * jax.random.normal(kb, (Cout,), jnp.float32)

    out = convolution_forward(x, weight, gamma, beta)
    out = jax.block_until_ready(out)

    ref = _reference(x, weight, gamma, beta)
    assert out.shape == (N, Cout, H, W)
    max_err = float(jnp.max(jnp.abs(out - ref)))
    assert jnp.allclose(out, ref, rtol=2e-3, atol=2e-3), f"mismatch {max_err}"

    print("KERNEL_OK")
</pallas_src>

<mosaic_0001>
module attributes {stable_mosaic.version = 11 : i64} {
  func.func @_fused_conv_bn_relu_kernel(%arg0: i32, %arg1: memref<32x216xbf16, #tpu.memory_space<vmem>>, %arg2: memref<216x128xbf16, #tpu.memory_space<vmem>>, %arg3: memref<128x128xf32, #tpu.memory_space<vmem>>, %arg4: memref<1x128xf32, #tpu.memory_space<vmem>>, %arg5: memref<1x128xf32, #tpu.memory_space<vmem>>, %arg6: memref<32x128xf32, #tpu.memory_space<vmem>>, %arg7: memref<2x128xf32, #tpu.memory_space<vmem>>) attributes {dimension_semantics = [#tpu.dimension_semantics<arbitrary>], iteration_bounds = array<i64: 1>, scalar_prefetch = 0 : i64, scratch_operands = 1 : i64, tpu.core_type = #tpu.core_type<tc>, window_params = [{transform_indices = @transform_0, window_bounds = array<i64: 32, 216>}, {pipeline_mode = #tpu.pipeline_mode<synchronous>, transform_indices = @transform_1, window_bounds = array<i64: 216, 128>}, {pipeline_mode = #tpu.pipeline_mode<synchronous>, transform_indices = @transform_2, window_bounds = array<i64: 128, 128>}, {pipeline_mode = #tpu.pipeline_mode<synchronous>, transform_indices = @transform_3, window_bounds = array<i64: 1, 128>}, {pipeline_mode = #tpu.pipeline_mode<synchronous>, transform_indices = @transform_4, window_bounds = array<i64: 1, 128>}, {pipeline_mode = #tpu.pipeline_mode<synchronous>, transform_indices = @transform_5, window_bounds = array<i64: 32, 128>}]} {
    %c0_i32 = arith.constant 0 : i32
    %0 = arith.cmpi eq, %arg0, %c0_i32 : i32
    %1 = arith.extui %0 : i1 to i32
    %c0_i32_0 = arith.constant 0 : i32
    %2 = arith.cmpi ne, %1, %c0_i32_0 : i32
    scf.if %2 {
      %cst_16 = arith.constant 0.000000e+00 : f32
      %24 = vector.broadcast %cst_16 : f32 to vector<2x128xf32>
      %c0_17 = arith.constant 0 : index
      %c0_18 = arith.constant 0 : index
      %25 = vector.load %arg7[%c0_17, %c0_18] : memref<2x128xf32, #tpu.memory_space<vmem>>, vector<2x128xf32>
      tpu.vector_store %arg7[%c0_17, %c0_18], %24 {strides = array<i32>} : memref<2x128xf32, #tpu.memory_space<vmem>>, vector<2x128xf32>,
    } else {
    }
    %c0 = arith.constant 0 : index
    %c0_1 = arith.constant 0 : index
    %3 = vector.load %arg1[%c0, %c0_1] : memref<32x216xbf16, #tpu.memory_space<vmem>>, vector<32x216xbf16>
    %c0_2 = arith.constant 0 : index
    %c0_3 = arith.constant 0 : index
    %4 = vector.load %arg2[%c0_2, %c0_3] : memref<216x128xbf16, #tpu.memory_space<vmem>>, vector<216x128xbf16>
    %cst = arith.constant dense<0.000000e+00> : vector<32x128xf32>
    %5 = tpu.matmul %3, %4, %cst {dimension_numbers = #tpu.dot_dimension_numbers<[1], [0], [0], [1], [0, 0, 1, 1], [], []>} : vector<32x216xbf16>, vector<216x128xbf16>, vector<32x128xf32> -> vector<32x128xf32>
    %c32_i32 = arith.constant 32 : i32
    %6 = arith.muli %arg0, %c32_i32 : i32
    %7 = tpu.assume_multiple %6, 32 : i32
    %8 = arith.index_cast %7 : i32 to index
    %c0_4 = arith.constant 0 : index
    %9 = vector.load %arg6[%8, %c0_4] : memref<32x128xf32, #tpu.memory_space<vmem>>, vector<32x128xf32>
    tpu.vector_store %arg6[%8, %c0_4], %5 {strides = array<i32>} : memref<32x128xf32, #tpu.memory_space<vmem>>, vector<32x128xf32>,
    %c0_5 = arith.constant 0 : index
    %c0_6 = arith.constant 0 : index
    %10 = vector.load %arg7[%c0_5, %c0_6] : memref<2x128xf32, #tpu.memory_space<vmem>>, vector<1x128xf32>
    %cst_7 = arith.constant dense<0.000000e+00> : vector<128xf32>
    %11 = vector.multi_reduction <add>, %5, %cst_7 [0] : vector<32x128xf32> to vector<128xf32>
    %12 = vector.shape_cast %11 : vector<128xf32> to vector<1x128xf32>
    %13 = arith.addf %10, %12 : vector<1x128xf32>
    %c0_8 = arith.constant 0 : index
    %c0_9 = arith.constant 0 : index
    %14 = vector.load %arg7[%c0_8, %c0_9] : memref<2x128xf32, #tpu.memory_space<vmem>>, vector<1x128xf32>
    tpu.vector_store %arg7[%c0_8, %c0_9], %13 {strides = array<i32>} : memref<2x128xf32, #tpu.memory_space<vmem>>, vector<1x128xf32>,
    %c1 = arith.constant 1 : index
    %c0_10 = arith.constant 0 : index
    %15 = vector.load %arg7[%c1, %c0_10] : memref<2x128xf32, #tpu.memory_space<vmem>>, vector<1x128xf32>
    %16 = arith.mulf %5, %5 : vector<32x128xf32>
    %cst_11 = arith.constant dense<0.000000e+00> : vector<128xf32>
    %17 = vector.multi_reduction <add>, %16, %cst_11 [0] : vector<32x128xf32> to vector<128xf32>
    %18 = vector.shape_cast %17 : vector<128xf32> to vector<1x128xf32>
    %19 = arith.addf %15, %18 : vector<1x128xf32>
    %c1_12 = arith.constant 1 : index
    %c0_13 = arith.constant 0 : index
    %20 = vector.load %arg7[%c1_12, %c0_13] : memref<2x128xf32, #tpu.memory_space<vmem>>, vector<1x128xf32>
    tpu.vector_store %arg7[%c1_12, %c0_13], %19 {strides = array<i32>} : memref<2x128xf32, #tpu.memory_space<vmem>>, vector<1x128xf32>,
    %c0_i32_14 = arith.constant 0 : i32
    %21 = arith.cmpi eq, %arg0, %c0_i32_14 : i32
    %22 = arith.extui %21 : i1 to i32
    %c0_i32_15 = arith.constant 0 : i32
    %23 = arith.cmpi ne, %22, %c0_i32_15 : i32
    scf.if %23 {
      %c0_16 = arith.constant 0 : index
      %c0_17 = arith.constant 0 : index
      %24 = vector.load %arg7[%c0_16, %c0_17] : memref<2x128xf32, #tpu.memory_space<vmem>>, vector<2x128xf32>
      %c0_18 = arith.constant 0 : index
      %c0_19 = arith.constant 0 : index
      %25 = vector.load %arg3[%c0_18, %c0_19] : memref<128x128xf32, #tpu.memory_space<vmem>>, vector<128x128xf32>
      %cst_20 = arith.constant dense<0.000000e+00> : vector<2x128xf32>
      %26 = tpu.matmul %24, %25, %cst_20 {dimension_numbers = #tpu.dot_dimension_numbers<[1], [0], [0], [1], [0, 0, 1, 1], [], []>} : vector<2x128xf32>, vector<128x128xf32>, vector<2x128xf32> -> vector<2x128xf32>
      %27 = vector.extract_strided_slice %26 {offsets = [0, 0], sizes = [1, 128], strides = [1, 1]} : vector<2x128xf32> to vector<1x128xf32>
      %cst_21 = arith.constant 0.001953125 : f32
      %28 = vector.broadcast %cst_21 : f32 to vector<1x128xf32>
      %29 = arith.mulf %27, %28 : vector<1x128xf32>
      %30 = vector.extract_strided_slice %26 {offsets = [1, 0], sizes = [1, 128], strides = [1, 1]} : vector<2x128xf32> to vector<1x128xf32>
      %cst_22 = arith.constant 0.001953125 : f32
      %31 = vector.broadcast %cst_22 : f32 to vector<1x128xf32>
      %32 = arith.mulf %30, %31 : vector<1x128xf32>
      %33 = arith.mulf %29, %29 : vector<1x128xf32>
      %34 = arith.subf %32, %33 : vector<1x128xf32>
      %c0_23 = arith.constant 0 : index
      %c0_24 = arith.constant 0 : index
      %35 = vector.load %arg4[%c0_23, %c0_24] : memref<1x128xf32, #tpu.memory_space<vmem>>, vector<1x128xf32>
      %cst_25 = arith.constant 9.99999974E-6 : f32
      %36 = vector.broadcast %cst_25 : f32 to vector<1x128xf32>
      %37 = arith.addf %34, %36 : vector<1x128xf32>
      %38 = math.rsqrt %37 : vector<1x128xf32>
      %39 = arith.mulf %35, %38 : vector<1x128xf32>
      %c0_26 = arith.constant 0 : index
      %c0_27 = arith.constant 0 : index
      %40 = vector.load %arg5[%c0_26, %c0_27] : memref<1x128xf32, #tpu.memory_space<vmem>>, vector<1x128xf32>
      %41 = arith.mulf %29, %39 : vector<1x128xf32>
      %42 = arith.subf %40, %41 : vector<1x128xf32>
      %c0_28 = arith.constant 0 : index
      %c0_29 = arith.constant 0 : index
      %43 = vector.load %arg6[%c0_28, %c0_29] : memref<32x128xf32, #tpu.memory_space<vmem>>, vector<32x128xf32>
      %44 = vector.broadcast %39 : vector<1x128xf32> to vector<32x128xf32>
      %45 = arith.mulf %43, %44 : vector<32x128xf32>
      %46 = vector.broadcast %42 : vector<1x128xf32> to vector<32x128xf32>
      %47 = arith.addf %45, %46 : vector<32x128xf32>
      %cst_30 = arith.constant 0.000000e+00 : f32
      %48 = vector.broadcast %cst_30 : f32 to vector<32x128xf32>
      %49 = arith.maximumf %47, %48 : vector<32x128xf32>
      %c0_31 = arith.constant 0 : index
      %c0_32 = arith.constant 0 : index
      %50 = vector.load %arg6[%c0_31, %c0_32] : memref<32x128xf32, #tpu.memory_space<vmem>>, vector<32x128xf32>
      tpu.vector_store %arg6[%c0_31, %c0_32], %49 {strides = array<i32>} : memref<32x128xf32, #tpu.memory_space<vmem>>, vector<32x128xf32>,
    } else {
    }
    return
  }
  func.func @transform_0(%arg0: i32) -> (i32, i32) {
    %c0_i32 = arith.constant 0 : i32
    %c0_i32_0 = arith.constant 0 : i32
    return %arg0, %c0_i32 : i32, i32
  }
  func.func @transform_1(%arg0: i32) -> (i32, i32) {
    %c0_i32 = arith.constant 0 : i32
    %c0_i32_0 = arith.constant 0 : i32
    %c0_i32_1 = arith.constant 0 : i32
    return %c0_i32, %c0_i32_0 : i32, i32
  }
  func.func @transform_2(%arg0: i32) -> (i32, i32) {
    %c0_i32 = arith.constant 0 : i32
    %c0_i32_0 = arith.constant 0 : i32
    %c0_i32_1 = arith.constant 0 : i32
    return %c0_i32, %c0_i32_0 : i32, i32
  }
  func.func @transform_3(%arg0: i32) -> (i32, i32) {
    %c0_i32 = arith.constant 0 : i32
    %c0_i32_0 = arith.constant 0 : i32
    %c0_i32_1 = arith.constant 0 : i32
    return %c0_i32, %c0_i32_0 : i32, i32
  }
  func.func @transform_4(%arg0: i32) -> (i32, i32) {
    %c0_i32 = arith.constant 0 : i32
    %c0_i32_0 = arith.constant 0 : i32
    %c0_i32_1 = arith.constant 0 : i32
    return %c0_i32, %c0_i32_0 : i32, i32
  }
  func.func @transform_5(%arg0: i32) -> (i32, i32) {
    %c0_i32 = arith.constant 0 : i32
    %c0_i32_0 = arith.constant 0 : i32
    %c0_i32_1 = arith.constant 0 : i32
    return %c0_i32, %c0_i32_0 : i32, i32
  }
}

</mosaic_0001>

<bundles_post_ra>
// kernel: tpu_custom_call.1
= control target key start
LH: loop header
LB: loop body
LE: loop exit
PB: predicated region body
PF: predicated region fallthrough
CT: control target
= control target key end

     0   :  { %10 = vsyncpa [#allocation4], 0  ;;  %s801_s0 = inlined_call_operand.hbm [shape: bf16[32,216], index: 0, kind: input, shape index: {}]   ;;  %s802_s1 = inlined_call_operand.hbm [shape: bf16[216,128], index: 1, kind: input, shape index: {}]   ;;  %s803_s2 = inlined_call_operand.hbm [shape: f32[128,128], index: 2, kind: input, shape index: {}]   ;;  %s804_s3 = inlined_call_operand.vmem [shape: f32[1,128], index: 3, kind: input, shape index: {}]   ;;  %s805_s4 = inlined_call_operand.vmem [shape: f32[1,128], index: 4, kind: input, shape index: {}]   ;;  %s806_s5 = inlined_call_operand.hbm [shape: f32[32,128], index: 5, kind: output, shape index: {}]  }
   0x1   :  { %11 = vsyncpa [#allocation7], 0 }
   0x2   :  { %12 = vsyncpa [#allocation5], 0  ;;  %s687_s18 = smov [#allocation6]   ;;  %s593_s22 = scalar_lea.hbm %s802_s1, 1728 }
   0x3   :  { %s30_s19 = sshll.u32 %s687_s18, 4  ;;  %p594_p0 = scmp.ne.s32.totalorder %s802_s1, %s593_s22  ;;  %s31_s19 = int_to_ptr.vmem [resolvable:$true] %s30_s19 }
   0x4   :  { %p597_p1 = scmp.lt.u32.totalorder %s593_s22, %s802_s1 }
   0x6   :  { %p599_p2 = pnand %p597_p1, %p594_p0 }
   0x8   :  { %602 = shalt.err (!%p599_p2)
}
   0x9   :  { %s603_s27 = scalar_lea.vmem %s31_s19, 1728  ;;  %p608_p4 = scmp.lt.s32.totalorder %s31_s19, %s31_s19 }
   0xa   :  { %p604_p3 = scmp.ne.s32.totalorder %s31_s19, %s603_s27  ;;  %p609_p5 = scmp.lt.s32.totalorder %s603_s27, %s603_s27 }
   0xc   :  { %p610_p6 = por %p609_p5, %p608_p4 }
   0xe   :  { %p611_p7 = pnand %p610_p6, %p604_p3 }
  0x10   :  { %614 = shalt.err (!%p611_p7)
}
  0x11   :  { %s688_s28 = smov 64   ;;  %s689_s29 = smov 4  }
  0x12   :  { %36 = dma.hbm_to_vmem [thread:$0]  %s802_s1, 1728, %s31_s19, [#allocation7], %s688_s28, %s688_s28, %s689_s29  }
  0x13   :  { %s690_s7 = smov [#allocation3]   ;;  %s615_s11 = scalar_lea.hbm %s801_s0, 512 }
  0x14   :  { %s18_s8 = sshll.u32 %s690_s7, 4  ;;  %p616_p8 = scmp.ne.s32.totalorder %s801_s0, %s615_s11  ;;  %s19_s8 = int_to_ptr.vmem [resolvable:$true] %s18_s8 }
  0x15   :  { %p619_p9 = scmp.lt.u32.totalorder %s615_s11, %s801_s0 }
  0x17   :  { %p621_p10 = pnand %p619_p9, %p616_p8 }
  0x19   :  { %624 = shalt.err (!%p621_p10)
}
  0x1a   :  { %s625_s16 = scalar_lea.vmem %s19_s8, 512  ;;  %p630_p12 = scmp.lt.s32.totalorder %s19_s8, %s19_s8 }
  0x1b   :  { %p626_p11 = scmp.ne.s32.totalorder %s19_s8, %s625_s16  ;;  %p631_p13 = scmp.lt.s32.totalorder %s625_s16, %s625_s16 }
  0x1d   :  { %p632_p0 = por %p631_p13, %p630_p12 }
  0x1f   :  { %p633_p1 = pnand %p632_p0, %p626_p11 }
  0x21   :  { %636 = shalt.err (!%p633_p1)
}
  0x22   :  { %s691_s1 = smov 128   ;;  %s692_s17 = smov 8  }
  0x23   :  { %24 = dma.hbm_to_vmem [thread:$0]  %s801_s0, 512, %s19_s8, [#allocation4], %s691_s1, %s691_s1, %s692_s17  }
  0x24   :  { %s693_s20 = smov [#allocation8]   ;;  %s637_s24 = scalar_lea.hbm %s803_s2, 2048 }
  0x25   :  { %s42_s21 = sshll.u32 %s693_s20, 4  ;;  %p638_p2 = scmp.ne.s32.totalorder %s803_s2, %s637_s24  ;;  %s43_s21 = int_to_ptr.vmem [resolvable:$true] %s42_s21 }
  0x26   :  { %p641_p3 = scmp.lt.u32.totalorder %s637_s24, %s803_s2 }
  0x28   :  { %p643_p4 = pnand %p641_p3, %p638_p2 }
  0x2a   :  { %646 = shalt.err (!%p643_p4)
}
  0x2b   :  { %s647_s29 = scalar_lea.vmem %s43_s21, 2048  ;;  %p652_p6 = scmp.lt.s32.totalorder %s43_s21, %s43_s21 }
  0x2c   :  { %p648_p5 = scmp.ne.s32.totalorder %s43_s21, %s647_s29  ;;  %p653_p7 = scmp.lt.s32.totalorder %s647_s29, %s647_s29 }
  0x2e   :  { %p654_p8 = por %p653_p7, %p652_p6 }
  0x30   :  { %p655_p9 = pnand %p654_p8, %p648_p5 }
  0x32   :  { %658 = shalt.err (!%p655_p9)
}
  0x33   :  { %48 = dma.hbm_to_vmem [thread:$0]  %s803_s2, 2048, %s43_s21, [#allocation7], %s691_s1, %s691_s1, %s692_s17  }
  0x34   :  { %681 = dma.done.wait [#allocation4], 512  }
  0x35   :  { %682 = vsyncadd [#allocation4], 4294966784 }
  0x36   :  { %683 = dma.done.wait [#allocation7], 3776  }
  0x37   :  { %684 = vsyncadd [#allocation7], 4294963520  ;;  %v694_v0 = vmov 0   ;;  %v571_v1 = vld [vmem:[#allocation6] sm:$0xff]   ;;  %v572_v2 = vld [vmem:[#allocation6 + $0x8] sm:$0xff]   ;;  %vm198_vm0 = vcmask 719872  }
  0x38   :  { %209 = vmatprep.subr.bf16.mxu0 %v694_v0  ;;  %v573_v3 = vld [vmem:[#allocation6 + $0x10] sm:$0xff]   ;;  %v574_v4 = vld [vmem:[#allocation6 + $0x18] sm:$0xff]   ;;  %v575_v5 = vld [vmem:[#allocation6 + $0x20] sm:$0xff]   ;;  %vm205_vm1 = vcmask 1043456   ;;  %v695_v23 = vmov 0.0|0.0   ;;  %v696_v33 = vmov 0.0  }
  0x39   :  { %210 = vmatpush1.bf16.msra.mxu0 %v571_v1  ;;  %v587_v6 = vld [vmem:[#allocation3 + $0x4] ss:$8 sps:$4 sm:$0xff]   ;;  %v577_v8 = vld [vmem:[#allocation6 + $0x30] sm:$0xff]   ;;  %v578_v9 = vld [vmem:[#allocation6 + $0x38] sm:$0xff]   ;;  %534 = vmatprep.subr.bf16.mxu1 %v695_v23  ;;  %67 = vst [vmem:[#allocation2] sm:$0x3] %v696_v33 }
  0x3a   :  { %211 = vmatprep.subr.bf16.mxu0 %v694_v0  ;;  %480 = vmatprep.mubr.msk.bf16.mxu0 %vm198_vm0, %v587_v6  ;;  %v576_v7 = vld [vmem:[#allocation6 + $0x28] sm:$0xff]   ;;  %v579_v10 = vld [vmem:[#allocation6 + $0x40] sm:$0xff]   ;;  %v581_v12 = vld [vmem:[#allocation6 + $0x50] sm:$0xff]   ;;  %vm697_vm2 = vmmov 0   ;;  %s699_s9 = smov [#allocation9]  }
  0x3b   :  { %v580_v11 = vld [vmem:[#allocation6 + $0x48] sm:$0xff]   ;;  %v582_v13 = vld [vmem:[#allocation6 + $0x58] sm:$0xff]   ;;  %v583_v14 = vld [vmem:[#allocation6 + $0x60] sm:$0xff]   ;;  %531 = vmatprep.mubr.msk.f32.mxu1 %vm697_vm2, %v696_v33  ;;  %s449_s10 = sshll.u32 %s699_s9, 4  ;;  %s450_s10 = int_to_ptr.vmem [resolvable:$true] %s449_s10 }
  0x3c   :  { %v584_v15 = vld [vmem:[#allocation6 + $0x68] ss:$0 sps:$4 sm:$0xff]   ;;  %v588_v18 = vld [vmem:[#allocation3 + $0x14] ss:$8 sps:$4 sm:$0xff]   ;;  %v590_v19 = vld [vmem:[#allocation3 + $0x10] ss:$8 sps:$4 sm:$0xff]   ;;  %p664_p11 = scmp.lt.s32.totalorder %s450_s10, %s450_s10 }
  0x3d   :  { %212 = vmatpush1.bf16.msra.mxu0 %v572_v2  ;;  %v207_v16 = vsel %vm205_vm1, %v584_v15, 0  ;;  %v585_v17 = vld [vmem:[#allocation3] ss:$8 sps:$4 sm:$0xff]   ;;  %v296_v20 = vld [vmem:[#allocation8] sm:$0xff]  ;;  %v297_v21 = vld [vmem:[#allocation8 + $0x8] sm:$0xff] }
  0x3e   :  { %213 = vmatprep.subr.bf16.mxu0 %v694_v0  ;;  %v535_v22 = vpack.c.bf16 %v297_v21, %v296_v20  ;;  %v298_v24 = vld [vmem:[#allocation8 + $0x10] sm:$0xff]  ;;  %v299_v25 = vld [vmem:[#allocation8 + $0x18] sm:$0xff]  ;;  %v300_v27 = vld [vmem:[#allocation8 + $0x20] sm:$0xff] }
  0x3f   :  { %v538_v26 = vpack.c.bf16 %v299_v25, %v298_v24  ;;  %v301_v28 = vld [vmem:[#allocation8 + $0x28] sm:$0xff]  ;;  %v302_v30 = vld [vmem:[#allocation8 + $0x30] sm:$0xff]  ;;  %v303_v31 = vld [vmem:[#allocation8 + $0x38] sm:$0xff]  ;;  %v698_v24 = vmov 1966171168  }
  0x40   :  { %536 = vmatpush3.bf16.msra.mxu1 %v535_v22  ;;  %v541_v29 = vpack.c.bf16 %v301_v28, %v300_v27  ;;  %v544_v32 = vpack.c.bf16 %v303_v31, %v302_v30  ;;  %v304_v34 = vld [vmem:[#allocation8 + $0x40] sm:$0xff]  ;;  %v305_v35 = vld [vmem:[#allocation8 + $0x48] sm:$0xff]  ;;  %v306_v37 = vld [vmem:[#allocation8 + $0x50] sm:$0xff]  ;;  %v393_v25 = vunpack.c.l.s4 %v698_v24 }
  0x41   :  { %214 = vmatpush1.bf16.msra.mxu0 %v573_v3  ;;  %537 = vmatprep.subr.bf16.mxu1 %v695_v23  ;;  %v547_v36 = vpack.c.bf16 %v305_v35, %v304_v34  ;;  %v307_v38 = vld [vmem:[#allocation8 + $0x58] sm:$0xff]  ;;  %v308_v40 = vld [vmem:[#allocation8 + $0x60] sm:$0xff]  ;;  %v309_v41 = vld [vmem:[#allocation8 + $0x68] sm:$0xff] }
  0x42   :  { %215 = vmatprep.subr.bf16.mxu0 %v694_v0  ;;  %v550_v39 = vpack.c.bf16 %v307_v38, %v306_v37  ;;  %v553_v42 = vpack.c.bf16 %v309_v41, %v308_v40  ;;  %v310_v43 = vld [vmem:[#allocation8 + $0x70] sm:$0xff]  ;;  %v311_v44 = vld [vmem:[#allocation8 + $0x78] sm:$0xff]  ;;  %v394_v27 = vunpack.c.0.s8 %v393_v25 }
  0x43   :  { %v556_v45 = vpack.c.bf16 %v311_v44, %v310_v43  ;;  %v388_v33 = vld [vmem:[%s804_s3] sm:$0x1]  ;;  %s659_s3 = scalar_lea.vmem %s450_s10, 512 }
  0x44   :  { %539 = vmatpush3.bf16.msra.mxu1 %v538_v26  ;;  %v395_v26 = vlaneseq  ;;  %v409_v37 = vld [vmem:[%s805_s4] sm:$0x1]  ;;  %p660_p10 = scmp.ne.s32.totalorder %s450_s10, %s659_s3  ;;  %p665_p12 = scmp.lt.s32.totalorder %s659_s3, %s659_s3 }
  0x45   :  { %216 = vmatpush1.bf16.msra.mxu0 %v574_v4  ;;  %540 = vmatprep.subr.bf16.mxu1 %v695_v23 }
  0x46   :  { %217 = vmatprep.subr.bf16.mxu0 %v694_v0  ;;  %v396_v28 = vshrl.u32 %v395_v26, 7  ;;  %p666_p13 = por %p665_p12, %p664_p11 }
  0x48   :  { %542 = vmatpush3.bf16.msra.mxu1 %v541_v29  ;;  %v397_v29 = vsub.s32 %v394_v27, %v396_v28  ;;  %v419_v35 = vsub.s32 0, %v396_v28  ;;  %p667_p0 = pnand %p666_p13, %p660_p10 }
  0x49   :  { %218 = vmatpush1.bf16.msra.mxu0 %v575_v5  ;;  %543 = vmatprep.subr.bf16.mxu1 %v695_v23 }
  0x4a   :  { %219 = vmatprep.subr.bf16.mxu0 %v694_v0 }
  0x4c   :  { %545 = vmatpush3.bf16.msra.mxu1 %v544_v32 }
  0x4d   :  { %220 = vmatpush1.bf16.msra.mxu0 %v576_v7  ;;  %546 = vmatprep.subr.bf16.mxu1 %v695_v23 }
  0x4e   :  { %221 = vmatprep.subr.bf16.mxu0 %v694_v0 }
  0x50   :  { %548 = vmatpush3.bf16.msra.mxu1 %v547_v36 }
  0x51   :  { %222 = vmatpush1.bf16.msra.mxu0 %v577_v8  ;;  %549 = vmatprep.subr.bf16.mxu1 %v695_v23 }
  0x52   :  { %223 = vmatprep.subr.bf16.mxu0 %v694_v0 }
  0x54   :  { %551 = vmatpush3.bf16.msra.mxu1 %v550_v39 }
  0x55   :  { %224 = vmatpush1.bf16.msra.mxu0 %v578_v9  ;;  %552 = vmatprep.subr.bf16.mxu1 %v695_v23  ;;  %v264_v9 = vld [vmem:[#allocation2] sm:$0x1] }
  0x56   :  { %225 = vmatprep.subr.bf16.mxu0 %v694_v0 }
  0x58   :  { %554 = vmatpush3.bf16.msra.mxu1 %v553_v42 }
  0x59   :  { %226 = vmatpush1.bf16.msra.mxu0 %v579_v10  ;;  %555 = vmatprep.subr.bf16.mxu1 %v695_v23 }
  0x5a   :  { %227 = vmatprep.subr.bf16.mxu0 %v694_v0 }
  0x5c   :  { %557 = vmatpush3.bf16.msra.mxu1 %v556_v45 }
  0x5d   :  { %228 = vmatpush1.bf16.msra.mxu0 %v580_v11 }
  0x5e   :  { %229 = vmatprep.subr.bf16.mxu0 %v694_v0 }
  0x61   :  { %230 = vmatpush1.bf16.msra.mxu0 %v581_v12  ;;  %v276_v12 = vld [vmem:[#allocation2 + $0x1] sm:$0x1] }
  0x62   :  { %231 = vmatprep.subr.bf16.mxu0 %v694_v0 }
  0x65   :  { %232 = vmatpush1.bf16.msra.mxu0 %v582_v13 }
  0x66   :  { %233 = vmatprep.subr.bf16.mxu0 %v694_v0 }
  0x69   :  { %234 = vmatpush1.bf16.msra.mxu0 %v583_v14 }
  0x6a   :  { %235 = vmatprep.subr.bf16.mxu0 %v694_v0 }
  0x6d   :  { %236 = vmatpush1.bf16.msra.mxu0 %v207_v16 }
  0x70   :  { %242 = vmatmul.mubr.bf16.vlgmr.msra.gmra.mrb[0].mxu0 %v585_v17 }
  0x71   :  { %481 = vmatprep.mubr.msk.bf16.mxu0 %vm198_vm0, %v588_v18 }
  0x78   :  { %250 = vmatmul.mubr.bf16.gmra.mrb[4].mxu0 %v590_v19 }
 0x143   :  { %v774_v46 = vpop.f32.mrb[0].mxu0 }
 0x144   :  { %v245_v47 = vpop.f32.mrb[1].mxu0  ;;  %v277_v49 = vmul.f32 %v774_v46, %v774_v46 }
 0x145   :  { %v246_v48 = vpop.f32.mrb[2].mxu0 }
 0x146   :  { %v265_v50 = vadd.f32 %v246_v48, %v774_v46  ;;  %v278_v51 = vmul.f32 %v246_v48, %v246_v48  ;;  %v248_v52 = vpop.f32.mrb[3].mxu0 }
 0x148   :  { %v281_v53 = vadd.f32 %v278_v51, %v277_v49 }
 0x14b   :  { %v251_v54 = vpop.f32.mrb[4].mxu0 }
 0x14c   :  { %v266_v55 = vadd.f32 %v265_v50, %v251_v54  ;;  %v279_v56 = vmul.f32 %v251_v54, %v251_v54  ;;  %v253_v57 = vpop.f32.mrb[5].mxu0 }
 0x14d   :  { %v254_v58 = vpop.f32.mrb[6].mxu0 }
 0x14e   :  { %v282_v59 = vadd.f32 %v281_v53, %v279_v56  ;;  %v267_v60 = vadd.f32 %v266_v55, %v254_v58  ;;  %v280_v61 = vmul.f32 %v254_v58, %v254_v58  ;;  %v256_v62 = vpop.f32.mrb[7].mxu0 }
 0x150   :  { %v268_v63 = vrot.slane %v267_v60, 4  ;;  %v283_v0 = vadd.f32 %v282_v59, %v280_v61 }
 0x152   :  { %v269_v1 = vadd.f32 %v268_v63, %v267_v60  ;;  %v284_v2 = vrot.slane %v283_v0, 4 }
 0x154   :  { %v270_v3 = vrot.slane %v269_v1, 2  ;;  %v285_v4 = vadd.f32 %v284_v2, %v283_v0 }
 0x156   :  { %v271_v5 = vadd.f32 %v270_v3, %v269_v1  ;;  %v286_v6 = vrot.slane %v285_v4, 2 }
 0x158   :  { %v272_v7 = vrot.slane %v271_v5, 1  ;;  %v287_v8 = vadd.f32 %v286_v6, %v285_v4 }
 0x15a   :  { %v273_v10 = vadd.f32 %v272_v7, %v271_v5  ;;  %v288_v11 = vrot.slane %v287_v8, 1 }
 0x15c   :  { %v289_v13 = vadd.f32 %v288_v11, %v287_v8  ;;  %v274_v14 = vadd.f32 %v273_v10, %v264_v9 }
 0x15e   :  { %275 = vst [vmem:[#allocation2] sm:$0x1] %v274_v14  ;;  %v290_v15 = vadd.f32 %v289_v13, %v276_v12 }
 0x160   :  { %291 = vst [vmem:[#allocation2 + $0x1] sm:$0x1] %v290_v15 }
 0x167   :  { %v295_v16 = vld [vmem:[#allocation2] sm:$0x3] }
 0x168   :  { %532 = vmatmul.mubr.f32.vlgmr.msra.gmra.mrb[0].mxu1 %v295_v16 }
 0x23b   :  { %v378_v17 = vpop.f32.mrb[0].mxu1 }
 0x23c   :  { %v382_v18 = vmul.f32 0.001953125, %v378_v17  ;;  %v533_v19 = vpop.f32.mrb[1].mxu1 }
 0x23e   :  { %v383_v20 = vmul.f32 %v382_v18, %v382_v18 }
 0x240   :  { %v385_v21 = vrot.slane %v383_v20, 7 }
 0x242   :  { %v387_v22 = vsub.f32 %v382_v18, %v385_v21 }
 0x244   :  { %v389_v23 = vadd.f32 1e-05, %v387_v22 }
 0x246   :  { %591 = vrsqrt.f32 %v389_v23 }
 0x250   :  { %v592_v30 = vpop.eup %591 }
 0x251   :  { %v398_v31 = vrot.slane %v592_v30, %v397_v29 }
 0x253   :  { %v399_v32 = vcombine.high %v398_v31, %v398_v31 }
 0x255   :  { %v406_v34 = vrot.slane %v399_v32, %v397_v29 }
 0x257   :  { %v408_v36 = vmul.f32 %v406_v34, %v388_v33 }
 0x259   :  { %v410_v38 = vmul.f32 %v408_v36, %v382_v18  ;;  %v420_v39 = vrot.slane %v408_v36, %v419_v35 }
 0x25b   :  { %v411_v40 = vsub.f32 %v409_v37, %v410_v38  ;;  %v422_v41 = vmul.f32 %v420_v39, %v774_v46  ;;  %v423_v42 = vmul.f32 %v420_v39, %v246_v48  ;;  %v424_v43 = vmul.f32 %v420_v39, %v251_v54 }
 0x25c   :  { %v425_v44 = vmul.f32 %v420_v39, %v254_v58 }
 0x25d   :  { %v430_v45 = vrot.slane %v411_v40, %v419_v35 }
 0x25f   :  { %v432_v47 = vadd.f32 %v430_v45, %v422_v41  ;;  %v433_v49 = vadd.f32 %v430_v45, %v423_v42  ;;  %v434_v50 = vadd.f32 %v430_v45, %v424_v43  ;;  %v435_v51 = vadd.f32 %v430_v45, %v425_v44 }
 0x261   :  { %v436_v52 = vmax.f32 %v432_v47, 0.0  ;;  %v437_v53 = vmax.f32 %v433_v49, 0.0  ;;  %v438_v55 = vmax.f32 %v434_v50, 0.0  ;;  %v439_v56 = vmax.f32 %v435_v51, 0.0 }
 0x263   :  { %440 = vst [vmem:[#allocation9] sm:$0xff] %v436_v52  ;;  %441 = vst [vmem:[#allocation9 + $0x8] sm:$0xff] %v437_v53 }
 0x264   :  { %442 = vst [vmem:[#allocation9 + $0x10] sm:$0xff] %v438_v55  ;;  %443 = vst [vmem:[#allocation9 + $0x18] sm:$0xff] %v439_v56 }
 0x265   :  { %670 = shalt.err (!%p667_p0)
}
 0x266   :  { %s671_s12 = scalar_lea.hbm %s806_s5, 512 }
 0x267   :  { %p672_p1 = scmp.ne.s32.totalorder %s806_s5, %s671_s12  ;;  %p675_p2 = scmp.lt.u32.totalorder %s671_s12, %s806_s5 }
 0x269   :  { %p677_p3 = pnand %p675_p2, %p672_p1 }
 0x26b   :  { %680 = shalt.err (!%p677_p3)
}
 0x26c   :  { %455 = dma.vmem_to_hbm [thread:$0]  %s450_s10, 512, %s806_s5, [#allocation5], %s691_s1, %s691_s1, %s692_s17  }
 0x26d   :  { %685 = dma.done.wait [#allocation5], 512  }
 0x26e   :  { %686 = vsyncadd [#allocation5], 4294966784 }
 0x26f   :  { %459 = vsyncpa [#allocation4], 1 }
 0x270   :  { %460 = vsyncpa [#allocation7], 1 }
 0x271   :  { %461 = vsyncpa [#allocation5], 1 }

</bundles_post_ra>
